<compile_context>
chip_gen: v6e
topology: v6e:2x2x1
jax: 0.10.0
libtpu: 0.0.40
codegen_flags: <defaults>
</compile_context>

<pallas_src>
import functools

import jax
import jax.numpy as jnp
from jax.experimental import pallas as pl
from jax.experimental.pallas import tpu as pltpu

EPSILON = 1e-8
_LANES = 128
# Total *input* bytes fetched per grid step (pred + target [+ mask]); with
# double buffering that is ~2x in VMEM plus one tiny 4 KiB output block, which
# stays inside v5e's 16 MiB default scoped VMEM and v7x's smaller VMEM.
_TARGET_STEP_BYTES = 4 * 1024 * 1024


def _round_up(x, m):
    return (x + m - 1) // m * m


def _pick_tile_rows(rows, budget_rows, force_split):
    """Tile size along a sublane-major axis: a multiple of 8, or == rows."""
    if rows <= 8:
        return rows
    t = max(8, (budget_rows // 8) * 8)
    if force_split:  # guarantee >=2 grid steps (v7x megacore sharding)
        t = min(t, _round_up(pl.cdiv(rows, 2), 8))
    if t >= rows:
        return rows
    return t


# ----------------------------------------------------------------------------
# Kernels
# ----------------------------------------------------------------------------
def _nomask_kernel(p_ref, t_ref, out_ref, *, rows, tile_rows, needs_tail):
    """One packed (8,128) partial block: rows 0-3 = sum|p-t|, rows 4-7 = max."""
    p = p_ref[...].astype(jnp.float32)
    t = t_ref[...].astype(jnp.float32)
    if needs_tail:  # last grid block over-runs the array; mask the garbage rows
        row = (jax.lax.broadcasted_iota(jnp.int32, p.shape, 0)
               + pl.program_id(0) * tile_rows)
        valid = row < rows
        diff = jnp.where(valid, jnp.abs(p - t), 0.0)
        p = jnp.where(valid, p, -jnp.inf)
        t = jnp.where(valid, t, -jnp.inf)
    else:
        diff = jnp.abs(p - t)
    s = jnp.sum(diff)
    m = jnp.maximum(jnp.max(p), jnp.max(t))
    r = jax.lax.broadcasted_iota(jnp.int32, out_ref.shape, 0)
    out_ref[...] = jnp.where(r < 4, s, m)


def _masked_kernel(p_ref, t_ref, m_ref, out_ref, *, s_rows, tile_rows,
                   needs_tail):
    """Packed (8,128) partials: row0 = sum(|p-t|*m), row1 = sum(m), row2+ = max.

    p_ref/t_ref: (1, C, tile_rows, s_lanes); m_ref: (1, Mc, tile_rows, s_lanes)
    with Mc in {1, C} — the mask broadcast over channels happens in-vreg along
    a major axis (never materialized in HBM).
    """
    p = p_ref[...].astype(jnp.float32)
    t = t_ref[...].astype(jnp.float32)
    m = m_ref[...].astype(jnp.float32)      # native mask dtype in HBM
    if needs_tail:
        off = pl.program_id(1) * tile_rows
        pvalid = (jax.lax.broadcasted_iota(jnp.int32, p.shape, 2) + off) < s_rows
        mvalid = (jax.lax.broadcasted_iota(jnp.int32, m.shape, 2) + off) < s_rows
        diff = jnp.where(pvalid, jnp.abs(p - t), 0.0)
        m = jnp.where(mvalid, m, 0.0)
        p = jnp.where(pvalid, p, -jnp.inf)
        t = jnp.where(pvalid, t, -jnp.inf)
    else:
        diff = jnp.abs(p - t)
    wd = jnp.sum(diff * m)                  # mask broadcasts over C if Mc == 1
    mk = jnp.sum(m)
    mx = jnp.maximum(jnp.max(p), jnp.max(t))
    r = jax.lax.broadcasted_iota(jnp.int32, out_ref.shape, 0)
    out_ref[...] = jnp.where(r == 0, wd, jnp.where(r == 1, mk, mx))


# ----------------------------------------------------------------------------
# Wrappers
# ----------------------------------------------------------------------------
def _loss_nomask(pred, target, epsilon):
    numel = pred.size
    itemsize = pred.dtype.itemsize

    # Lane axis: 128 when it divides numel (free flat reshape), otherwise the
    # original trailing dim (also free; avoids any padded HBM copy).
    # TODO(synk): a huge non-128-divisible trailing dim would force an
    # oversized block here; such shapes would need a 1-D tail pass.
    if numel % _LANES == 0:
        lanes = _LANES
    else:
        lanes = pred.shape[-1] if pred.ndim else 1
    rows = numel // lanes

    p2 = pred.reshape(rows, lanes)
    t2 = target.reshape(rows, lanes)

    budget_rows = max(1, _TARGET_STEP_BYTES // (2 * lanes * itemsize))
    tile_rows = _pick_tile_rows(rows, budget_rows, force_split=True)
    num_tiles = pl.cdiv(rows, tile_rows)
    needs_tail = (rows % tile_rows) != 0

    kernel = functools.partial(_nomask_kernel, rows=rows, tile_rows=tile_rows,
                               needs_tail=needs_tail)
    in_spec = pl.BlockSpec((tile_rows, lanes), lambda i: (i, 0))
    out = pl.pallas_call(
        kernel,
        out_shape=jax.ShapeDtypeStruct((num_tiles * 8, _LANES), jnp.float32),
        grid=(num_tiles,),
        in_specs=[in_spec, in_spec],
        out_specs=pl.BlockSpec((8, _LANES), lambda i: (i, 0)),
        compiler_params=pltpu.CompilerParams(
            dimension_semantics=("parallel",)),
    )(p2, t2)

    sum_absdiff = jnp.sum(out[0::8, 0])
    max_val = jnp.max(out[4::8, 0]) + epsilon
    sim_sum = numel - sum_absdiff / max_val
    return 1.0 - sim_sum / (numel + epsilon)


def _loss_masked(pred, target, mask, epsilon):
    assert pred.ndim == 4, "masked path expects NCHW pred/target"
    N, C, H, W = pred.shape
    if mask.ndim == 3:
        mask = mask[:, None, :, :]
    assert mask.ndim == 4 and mask.shape[0] == N and mask.shape[2:] == (H, W)
    Mc = mask.shape[1]
    assert Mc in (1, C), "mask channel dim must be 1 or C"
    # TODO(synk): general broadcastable mask shapes beyond (N,1,H,W)/(N,C,H,W).
    bfac = C // Mc  # how many times each mask element counts after broadcast

    if mask.dtype == jnp.bool_:
        mask = mask.astype(jnp.int8)    # tiny 1-byte cast; other dtypes stay native

    HW = H * W
    # Lane-dense spatial layout when possible: (N, C, HW//128, 128); otherwise
    # keep (H, W) as the trailing dims (still a free reshape, no padded copy).
    if HW % _LANES == 0:
        s_rows, s_lanes = HW // _LANES, _LANES
    else:
        s_rows, s_lanes = H, W
    p4 = pred.reshape(N, C, s_rows, s_lanes)
    t4 = target.reshape(N, C, s_rows, s_lanes)
    m4 = mask.reshape(N, Mc, s_rows, s_lanes)

    step_row_bytes = (2 * C * pred.dtype.itemsize
                      + Mc * mask.dtype.itemsize) * s_lanes
    budget_rows = max(1, _TARGET_STEP_BYTES // step_row_bytes)
    tile_rows = _pick_tile_rows(s_rows, budget_rows, force_split=(N == 1))
    s_tiles = pl.cdiv(s_rows, tile_rows)
    needs_tail = (s_rows % tile_rows) != 0

    kernel = functools.partial(_masked_kernel, s_rows=s_rows,
                               tile_rows=tile_rows, needs_tail=needs_tail)
    pt_spec = pl.BlockSpec((1, C, tile_rows, s_lanes), lambda n, s: (n, 0, s, 0))
    m_spec = pl.BlockSpec((1, Mc, tile_rows, s_lanes), lambda n, s: (n, 0, s, 0))
    out = pl.pallas_call(
        kernel,
        out_shape=jax.ShapeDtypeStruct((N * s_tiles * 8, _LANES), jnp.float32),
        grid=(N, s_tiles),
        in_specs=[pt_spec, pt_spec, m_spec],
        out_specs=pl.BlockSpec((8, _LANES), lambda n, s: (n * s_tiles + s, 0)),
        compiler_params=pltpu.CompilerParams(
            dimension_semantics=("parallel", "parallel")),
    )(p4, t4, m4)

    wd_sum = jnp.sum(out[0::8, 0])        # sum(|p-t| * broadcast mask)
    mask_sum = jnp.sum(out[1::8, 0])      # sum of the un-broadcast mask
    max_val = jnp.max(out[2::8, 0]) + epsilon
    sim_sum = bfac * mask_sum - wd_sum / max_val
    return 1.0 - sim_sum / (mask_sum + epsilon)


def custom_f1_loss(pred, target, mask=None, epsilon=EPSILON):
    assert pred.shape == target.shape
    if mask is None:
        return _loss_nomask(pred, target, epsilon)
    return _loss_masked(pred, target, mask, epsilon)


# ----------------------------------------------------------------------------
# Pure-JAX reference (mirrors the PyTorch module)
# ----------------------------------------------------------------------------
def _reference_loss(pred, target, mask=None, epsilon=EPSILON):
    diff = jnp.abs(pred - target)
    max_val = jnp.maximum(jnp.max(pred), jnp.max(target)) + epsilon
    similarity = 1.0 - diff / max_val
    if mask is not None:
        if mask.ndim == 3:
            mask = mask[:, None, :, :]
        similarity = similarity * mask
        denominator = jnp.sum(mask) + epsilon
    else:
        denominator = pred.size + epsilon
    return 1.0 - jnp.sum(similarity) / denominator


if __name__ == "__main__":
    key = jax.random.PRNGKey(0)
    k1, k2, k3, k4, k5 = jax.random.split(key, 5)

    N, C, H, W = 2, 4, 16, 16
    pred = jax.random.normal(k1, (N, C, H, W), dtype=jnp.float32)
    target = jax.random.normal(k2, (N, C, H, W), dtype=jnp.float32)
    mask3d = (jax.random.uniform(k3, (N, H, W)) > 0.5).astype(jnp.float32)

    # No-mask path (lane-dense layout, split grid)
    loss = jax.block_until_ready(custom_f1_loss(pred, target))
    ref = _reference_loss(pred, target)
    assert jnp.allclose(loss, ref, atol=1e-5, rtol=1e-4), (loss, ref)

    # 3-D mask (Mc=1, broadcast over C inside the kernel)
    loss_m = jax.block_until_ready(custom_f1_loss(pred, target, mask3d))
    ref_m = _reference_loss(pred, target, mask3d)
    assert jnp.allclose(loss_m, ref_m, atol=1e-5, rtol=1e-4), (loss_m, ref_m)

    # Full 4-D (per-channel) mask
    mask4d = (jax.random.uniform(k4, (N, C, H, W)) > 0.3).astype(jnp.float32)
    loss_m4 = jax.block_until_ready(custom_f1_loss(pred, target, mask4d))
    ref_m4 = _reference_loss(pred, target, mask4d)
    assert jnp.allclose(loss_m4, ref_m4, atol=1e-5, rtol=1e-4), (loss_m4, ref_m4)

    # Ragged spatial shape with all-negative values: exercises the non-128
    # layout branch and the in-kernel tail mask (no padded copies anywhere).
    N2, C2, H2, W2 = 2, 3, 15, 17
    pred2 = -jnp.abs(jax.random.normal(k5, (N2, C2, H2, W2), jnp.float32)) - 1.0
    target2 = -jnp.abs(jax.random.normal(k1, (N2, C2, H2, W2), jnp.float32)) - 1.0
    mask2 = (jax.random.uniform(k2, (N2, H2, W2)) > 0.5).astype(jnp.float32)

    l2 = jax.block_until_ready(custom_f1_loss(pred2, target2))
    r2 = _reference_loss(pred2, target2)
    assert jnp.allclose(l2, r2, atol=1e-5, rtol=1e-4), (l2, r2)

    l2m = jax.block_until_ready(custom_f1_loss(pred2, target2, mask2))
    r2m = _reference_loss(pred2, target2, mask2)
    assert jnp.allclose(l2m, r2m, atol=1e-5, rtol=1e-4), (l2m, r2m)

    # N=1 case: forces a spatial grid split (v7x) and masked tail tile.
    N3, C3, H3, W3 = 1, 2, 40, 32
    pred3 = jax.random.normal(k3, (N3, C3, H3, W3), dtype=jnp.float32)
    target3 = jax.random.normal(k4, (N3, C3, H3, W3), dtype=jnp.float32)
    mask3 = (jax.random.uniform(k5, (N3, H3, W3)) > 0.4).astype(jnp.float32)
    l3 = jax.block_until_ready(custom_f1_loss(pred3, target3, mask3))
    r3 = _reference_loss(pred3, target3, mask3)
    assert jnp.allclose(l3, r3, atol=1e-5, rtol=1e-4), (l3, r3)

    print("KERNEL_OK")
</pallas_src>

<mosaic_0001>
module attributes {stable_mosaic.version = 11 : i64} {
  func.func @_nomask_kernel(%arg0: i32, %arg1: memref<8x128xf32, #tpu.memory_space<vmem>>, %arg2: memref<8x128xf32, #tpu.memory_space<vmem>>, %arg3: memref<8x128xf32, #tpu.memory_space<vmem>>) attributes {dimension_semantics = [#tpu.dimension_semantics<parallel>], iteration_bounds = array<i64: 2>, scalar_prefetch = 0 : i64, scratch_operands = 0 : i64, tpu.core_type = #tpu.core_type<tc>, window_params = [{transform_indices = @transform_0, window_bounds = array<i64: 8, 128>}, {transform_indices = @transform_1, window_bounds = array<i64: 8, 128>}, {transform_indices = @transform_2, window_bounds = array<i64: 8, 128>}]} {
    %c0 = arith.constant 0 : index
    %c0_0 = arith.constant 0 : index
    %0 = vector.load %arg1[%c0, %c0_0] : memref<8x128xf32, #tpu.memory_space<vmem>>, vector<8x128xf32>
    %c0_1 = arith.constant 0 : index
    %c0_2 = arith.constant 0 : index
    %1 = vector.load %arg2[%c0_1, %c0_2] : memref<8x128xf32, #tpu.memory_space<vmem>>, vector<8x128xf32>
    %2 = arith.subf %0, %1 : vector<8x128xf32>
    %3 = math.absf %2 : vector<8x128xf32>
    %4 = vector.shape_cast %3 : vector<8x128xf32> to vector<1x8x128xf32>
    %cst = arith.constant dense<0.000000e+00> : vector<1xf32>
    %5 = vector.multi_reduction <add>, %4, %cst [1, 2] : vector<1x8x128xf32> to vector<1xf32>
    %6 = vector.shape_cast %5 : vector<1xf32> to vector<1x1x1xf32>
    %7 = vector.extract %6[0, 0, 0] : f32 from vector<1x1x1xf32>
    %8 = vector.shape_cast %0 : vector<8x128xf32> to vector<1x8x128xf32>
    %cst_3 = arith.constant dense<0xFF800000> : vector<1xf32>
    %9 = vector.multi_reduction <maximumf>, %8, %cst_3 [1, 2] : vector<1x8x128xf32> to vector<1xf32>
    %10 = vector.shape_cast %9 : vector<1xf32> to vector<1x1x1xf32>
    %11 = vector.extract %10[0, 0, 0] : f32 from vector<1x1x1xf32>
    %12 = vector.shape_cast %1 : vector<8x128xf32> to vector<1x8x128xf32>
    %cst_4 = arith.constant dense<0xFF800000> : vector<1xf32>
    %13 = vector.multi_reduction <maximumf>, %12, %cst_4 [1, 2] : vector<1x8x128xf32> to vector<1xf32>
    %14 = vector.shape_cast %13 : vector<1xf32> to vector<1x1x1xf32>
    %15 = vector.extract %14[0, 0, 0] : f32 from vector<1x1x1xf32>
    %16 = arith.maximumf %11, %15 : f32
    %17 = tpu.iota {dimensions = array<i32: 0>} : vector<8x128xi32>
    %c4_i32 = arith.constant 4 : i32
    %18 = vector.broadcast %c4_i32 : i32 to vector<8x128xi32>
    %19 = arith.cmpi slt, %17, %18 : vector<8x128xi32>
    %20 = vector.broadcast %7 : f32 to vector<8x128xf32>
    %21 = vector.broadcast %16 : f32 to vector<8x128xf32>
    %22 = arith.select %19, %20, %21 : vector<8x128xi1>, vector<8x128xf32>
    %c0_5 = arith.constant 0 : index
    %c0_6 = arith.constant 0 : index
    %23 = vector.load %arg3[%c0_5, %c0_6] : memref<8x128xf32, #tpu.memory_space<vmem>>, vector<8x128xf32>
    tpu.vector_store %arg3[%c0_5, %c0_6], %22 {strides = array<i32>} : memref<8x128xf32, #tpu.memory_space<vmem>>, vector<8x128xf32>,
    return
  }
  func.func @transform_0(%arg0: i32) -> (i32, i32) {
    %c0_i32 = arith.constant 0 : i32
    %c0_i32_0 = arith.constant 0 : i32
    return %arg0, %c0_i32 : i32, i32
  }
  func.func @transform_1(%arg0: i32) -> (i32, i32) {
    %c0_i32 = arith.constant 0 : i32
    %c0_i32_0 = arith.constant 0 : i32
    return %arg0, %c0_i32 : i32, i32
  }
  func.func @transform_2(%arg0: i32) -> (i32, i32) {
    %c0_i32 = arith.constant 0 : i32
    %c0_i32_0 = arith.constant 0 : i32
    return %arg0, %c0_i32 : i32, i32
  }
}

</mosaic_0001>

<bundles_post_ra>
// kernel: tpu_custom_call.1
= control target key start
LH: loop header
LB: loop body
LE: loop exit
PB: predicated region body
PF: predicated region fallthrough
CT: control target
= control target key end

     0   :  { %7 = vsyncpa [#allocation3], 0  ;;  %s763_s0 = inlined_call_operand.hbm [shape: f32[16,128], index: 0, kind: input, shape index: {}]   ;;  %s764_s1 = inlined_call_operand.hbm [shape: f32[16,128], index: 1, kind: input, shape index: {}]   ;;  %s765_s2 = inlined_call_operand.hbm [shape: f32[16,128], index: 2, kind: output, shape index: {}]  }
   0x1   :  { %9 = vsyncpa [#allocation3 + $0x1], 0 }
   0x2   :  { %10 = vsyncpa [#allocation6], 0 }
   0x3   :  { %12 = vsyncpa [#allocation6 + $0x1], 0 }
   0x4   :  { %13 = vsyncpa [#allocation4], 0 }
   0x5   :  { %15 = vsyncpa [#allocation4 + $0x1], 0  ;;  %s558_s9 = smov 0   ;;  %s560_s10 = smov 0  }
   0x6   :  { %s562_s11 = smov 0   ;;  %s564_s12 = smov 0  }
   0x7 LB: > { %s579_s13 = sadd.s32 4294967295, %s538_s12   ;;  %s342_s14 = sadd.s32 4294967294, %s538_s12   ;;  %s538_s12 = sphi %s564_s12, %s784_s12   ;;  %s534_s11 = sphi %s562_s11, %s783_s11   ;;  %s530_s10 = sphi %s560_s10, %s782_s10   ;;  %s526_s9 = sphi %s558_s9, %s781_s9  }
   0x8   : > { %s583_s15 = sadd.s32 1, %s538_s12   ;;  %s28_s16 = sadd.s32 1, %s534_s11 }
   0x9   : > { %s25_s17 = ssub.s32 %s538_s12, %s583_s15  ;;  %p35_p0 = scmp.ne.s32.totalorder %s534_s11, %s530_s10 }
   0xa   : > { %p26_p1 = scmp.eq.s32.totalorder %s25_s17, 0  ;;  %p36_p2 = scmp.eq.s32.totalorder %s538_s12, 0 }
   0xb   : > { %p41_p3 = scmp.ne.s32.totalorder %s530_s10, %s526_s9  ;;  %p42_p4 = scmp.eq.s32.totalorder %s579_s13, 0 }
   0xc   : > { %s595_s18 = scalar_select %p26_p1, %s534_s11, %s28_s16  }
   0xd   : > { %p597_p5 = por %p36_p2, %p35_p0  ;;  %p601_p6 = por %p42_p4, %p41_p3 }
   0xe   : > { %p91_p7 = scmp.eq.s32.totalorder %s579_s13, 1  ;;  %p97_p8 = scmp.eq.s32.totalorder %s342_s14, 1 }
   0xf   : > { %s769_s20 = scalar_select %p601_p6, 1, 0 }
  0x10   : > { %p380_p10 = scmp.lt.s32.totalorder %s538_s12, 2  ;;  %p608_p11 = por %p91_p7, %p35_p0 }
  0x11   : > { %p612_p12 = por %p97_p8, %p41_p3  ;;  %s617_s23 = sand.u32 1, %s534_s11  }
  0x12   : > { %s770_s21 = scalar_select %p608_p11, 1, 0 }
  0x13   : > { %s771_s22 = scalar_select %p612_p12, 1, 0 }
  0x14   : > { %s346_s24 = sshll.u32 %s538_s12, 7  ;;  %s345_s25 = sshll.u32 %s617_s23, 3 }
  0x15   : > { %s626_s28 = scalar_lea.hbm %s763_s0, %s346_s24  ;;  %s121_s29 = scalar_lea.vmem [#allocation2], %s345_s25 }
  0x16   : > { %s128_s30 = sshll.u32 %s121_s29, 4  ;;  %p632_p13 = pnand %p380_p10, %p597_p5  ;;  %s636_s30 = int_to_ptr.vmem [resolvable:$true] %s128_s30 }
  0x17   : > { %s118_s4 = scalar_lea.sflag [#allocation3], %s617_s23  ;;  %s414_s5 = scalar_lea.hbm %s626_s28, 128 }
  0x18   : > { %p415_p2 = scmp.ne.s32.totalorder %s626_s28, %s414_s5  ;;  %p416_p3 = pneg %p632_p13 }
  0x19   : > { %s419_s8 = scalar_lea.hbm %s763_s0, 256  ;;  %p420_p5 = scmp.lt.s32.totalorder %s626_s28, %s763_s0 }
  0x1a   : > { %p417_p4 = pnand %p416_p3, %p415_p2  ;;  %p421_p8 = scmp.lt.s32.totalorder %s419_s8, %s414_s5 }
  0x1c   : > { %p418_p7 = pneg %p417_p4  ;;  %p422_p10 = por %p421_p8, %p420_p5 }
  0x1e   : > { %p423_p9 = pnand %p422_p10, %p418_p7 }
  0x20   : > { %426 = shalt.err (!%p423_p9)
}
  0x21   : > { %s427_s17 = scalar_lea.vmem %s636_s30, 128  ;;  %s540_s19 = smov [#allocation2]  }
  0x22   : > { %p428_p0 = scmp.ne.s32.totalorder %s636_s30, %s427_s17  ;;  %s432_s26 = sshll.u32 %s540_s19, 4  ;;  %s433_s26 = int_to_ptr.vmem [resolvable:$false] %s432_s26 }
  0x23   : > { %s434_s27 = scalar_lea.vmem %s433_s26, 256  ;;  %p435_p1 = scmp.lt.s32.totalorder %s636_s30, %s433_s26 }
  0x24   : > { %p430_p2 = pnand %p428_p0, %p416_p3  ;;  %p436_p12 = scmp.lt.s32.totalorder %s434_s27, %s427_s17 }
  0x26   : > { %p431_p4 = pneg %p430_p2  ;;  %p437_p11 = por %p436_p12, %p435_p1 }
  0x28   : > { %p438_p5 = pnand %p437_p11, %p431_p4 }
  0x2a   : > { %441 = shalt.err (!%p438_p5)
}
  0x2b   : > { %372 = dma.hbm_to_vmem [thread:$0]  (!%p632_p13), %s626_s28, 128, %s636_s30, %s118_s4  }
  0x2c   : > { %p773_p9 = scmp.lt.s32.totalorder %s538_s12, 3  ;;  %p774_p0 = scmp.ge.s32.totalorder %s538_s12, 1 }
  0x2d   : > { %s678_s7 = scalar_lea.hbm %s764_s1, %s346_s24  ;;  %s139_s8 = scalar_lea.vmem [#allocation5], %s345_s25 }
  0x2e   : > { %p669_p7 = pnand %p774_p0, %p773_p9  ;;  %s146_s14 = sshll.u32 %s139_s8, 4  ;;  %s147_s14 = int_to_ptr.vmem [resolvable:$true] %s146_s14 }
  0x2f   : > { %s136_s28 = scalar_lea.sflag [#allocation6], %s617_s23  ;;  %s442_s30 = scalar_lea.hbm %s678_s7, 128 }
  0x30   : > { %s775_s29 = scalar_select %p669_p7, 1, 0 }
  0x31   : > { %p443_p11 = scmp.ne.s32.totalorder %s678_s7, %s442_s30  ;;  %s447_s17 = scalar_lea.hbm %s764_s1, 256 }
  0x32   : > { %p448_p8 = scmp.lt.s32.totalorder %s678_s7, %s764_s1  ;;  %p449_p10 = scmp.lt.s32.totalorder %s447_s17, %s442_s30 }
  0x33   : > { %p445_p12 = pnand %p443_p11, %p416_p3 }
  0x34   : > { %p450_p2 = por %p449_p10, %p448_p8 }
  0x35   : > { %p446_p1 = pneg %p445_p12 }
  0x37   : > { %p451_p4 = pnand %p450_p2, %p446_p1 }
  0x39   : > { %454 = shalt.err (!%p451_p4)
}
  0x3a   : > { %s455_s25 = scalar_lea.vmem %s147_s14, 128  ;;  %s541_s23 = smov [#allocation5]  }
  0x3b   : > { %p456_p5 = scmp.ne.s32.totalorder %s147_s14, %s455_s25  ;;  %s460_s26 = sshll.u32 %s541_s23, 4  ;;  %s461_s26 = int_to_ptr.vmem [resolvable:$false] %s460_s26 }
  0x3c   : > { %s462_s27 = scalar_lea.vmem %s461_s26, 256  ;;  %p463_p11 = scmp.lt.s32.totalorder %s147_s14, %s461_s26 }
  0x3d   : > { %p458_p9 = pnand %p456_p5, %p416_p3  ;;  %p464_p12 = scmp.lt.s32.totalorder %s462_s27, %s455_s25 }
  0x3f   : > { %p459_p0 = pneg %p458_p9  ;;  %p465_p6 = por %p464_p12, %p463_p11 }
  0x41   : > { %p466_p7 = pnand %p465_p6, %p459_p0 }
  0x43   : > { %469 = shalt.err (!%p466_p7)
}
  0x44   : > { %375 = dma.hbm_to_vmem [thread:$0]  (!%p632_p13), %s678_s7, 128, %s147_s14, %s136_s28  }
  0x45   : > { %p776_p1 = scmp.ne.s32.totalorder %s775_s29, 0 }
  0x46   : > { %s704_s5 = sand.u32 (!%p776_p1), 1, %s530_s10   ;;  %p777_p6 = scmp.ne.s32.totalorder (!%p776_p1), %s769_s20, 0 }
  0x47   : > { %155 = sbr.rel (%p776_p1) target bundleno = 305 (0x131), region = 28  ;;  %s707_s6 = sshll.u32 (!%p776_p1), %s704_s5, 3 }
  0x48   : > { %s158_s8 = scalar_lea.sflag (!%p776_p1), [#allocation3], %s704_s5  ;;  %s161_s30 = scalar_lea.vmem (!%p776_p1), [#allocation2], %s707_s6 }
  0x4c   : > { %513 = dma.done.wait (%p777_p6), %s158_s8, 128  }
  0x4d   : > { %515 = vsyncadd (%p777_p6), %s158_s8, 4294967168  ;;  %s167_s3 = scalar_lea.sflag [#allocation6], %s704_s5  ;;  %s170_s29 = scalar_lea.vmem [#allocation5], %s707_s6 }
  0x4e   : > { %517 = dma.done.wait (%p777_p6), %s167_s3, 128  }
  0x4f   : > { %519 = vsyncadd (%p777_p6), %s167_s3, 4294967168  ;;  %v197_v0 = vld [vmem:[%s170_s29] sm:$0xff]  ;;  %v196_v1 = vld [vmem:[%s161_s30] sm:$0xff]  ;;  %v228_v25 = vlaneseq  ;;  %s354_s7 = sshll.u32 %s579_s13, 7  ;;  %s195_s28 = scalar_lea.vmem [#allocation7], %s707_s6 }
  0x50   : > { %218 = vmax.xlane.f32.xlu1 %v197_v0  ;;  %v198_v2 = vsub.f32 %v196_v1, %v197_v0  ;;  %s249_s4 = sshll.u32 %s195_s28, 4  ;;  %s726_s25 = scalar_lea.hbm %s765_s2, %s354_s7  ;;  %s250_s4 = int_to_ptr.vmem [resolvable:$true] %s249_s4 }
  0x51   : > { %v229_v26 = vshrl.u32 %v228_v25, 7  ;;  %s236_s23 = scalar_lea.sflag [#allocation4], %s704_s5  ;;  %s470_s26 = scalar_lea.vmem %s250_s4, 128 }
  0x52   : > { %v199_v3 = vand.u32 2147483647, %v198_v2  ;;  %p471_p13 = scmp.ne.s32.totalorder %s250_s4, %s470_s26  ;;  %p778_p3 = scmp.ne.s32.totalorder %s770_s21, 0 }
  0x53   : > { %vm230_vm0 = vcmp.lt.s32.totalorder %v229_v26, 4  ;;  %s542_s13 = smov [#allocation7]  }
  0x54   : > { %200 = vadd.xlane.f32.xlu0 %v199_v3  ;;  %p472_p7 = pnand %p471_p13, %p778_p3  ;;  %s474_s27 = sshll.u32 %s542_s13, 4  ;;  %s475_s27 = int_to_ptr.vmem [resolvable:$false] %s474_s27 }
  0x55   : > { %s476_s6 = scalar_lea.vmem %s475_s27, 256  ;;  %p477_p10 = scmp.lt.s32.totalorder %s250_s4, %s475_s27 }
  0x56   : > { %p473_p8 = pneg %p472_p7  ;;  %p478_p2 = scmp.lt.s32.totalorder %s476_s6, %s470_s26 }
  0x58   : > { %209 = vmax.xlane.f32.xlu0 %v196_v1  ;;  %p479_p4 = por %p478_p2, %p477_p10 }
  0x5a   : > { %p480_p5 = pnand %p479_p4, %p473_p8 }
  0xd9   : > { %v219_v4 = vpop.xlane.xlu1 %218 }
  0xda   : > { %v220_v5 = vrot.slane %v219_v4, 4 }
  0xdc   : > { %v221_v6 = vmax.f32 %v219_v4, %v220_v5 }
  0xdd   : > { %v201_v7 = vpop.xlane.xlu0 %200 }
  0xde   : > { %v202_v8 = vrot.slane %v201_v7, 4  ;;  %v222_v10 = vrot.slane %v221_v6, 2 }
  0xe0   : > { %v203_v9 = vadd.f32 %v202_v8, %v201_v7  ;;  %v223_v16 = vmax.f32 %v221_v6, %v222_v10 }
  0xe1   : > { %v210_v11 = vpop.xlane.xlu0 %209 }
  0xe2   : > { %v204_v12 = vrot.slane %v203_v9, 2  ;;  %v211_v13 = vrot.slane %v210_v11, 4  ;;  %v224_v21 = vrot.slane %v223_v16, 1 }
  0xe4   : > { %v212_v14 = vmax.f32 %v210_v11, %v211_v13  ;;  %v205_v15 = vadd.f32 %v204_v12, %v203_v9  ;;  %v225_v24 = vmax.f32 %v223_v16, %v224_v21 }
  0xe6   : > { %v213_v17 = vrot.slane %v212_v14, 2  ;;  %v206_v18 = vrot.slane %v205_v15, 1 }
  0xe8   : > { %v214_v19 = vmax.f32 %v212_v14, %v213_v17  ;;  %v207_v20 = vadd.f32 %v206_v18, %v205_v15 }
  0xea   : > { %357 = vpush %v207_v20  ;;  %v215_v22 = vrot.slane %v214_v19, 1 }
  0xec   : > { %v216_v23 = vmax.f32 %v214_v19, %v215_v22 }
  0xee   : > { %359 = vpush %v216_v23 }
  0xef   : > { %361 = vpush %v225_v24 }
 0x11b   : > { %s358_s20 = spop %357 }
 0x11c   : > { %v231_v27 = vstv %s358_s20 }
 0x11f   : > { %s360_s14 = spop %359 }
 0x120   : > { %s362_s16 = spop %361 }
 0x121   : > { %s227_s17 = smax.f32 %s362_s16, %s360_s14 }
 0x122   : > { %v232_v28 = vstv %s227_s17 }
 0x123   : > { %v233_v29 = vsel %vm230_vm0, %v231_v27, %v232_v28 }
 0x124   : > { %234 = vst [vmem:[%s195_s28] sm:$0xff] %v233_v29 }
 0x125   : > { %483 = shalt.err (!%p480_p5)
}
 0x126   : > { %s484_s8 = scalar_lea.hbm %s726_s25, 128  ;;  %s488_s3 = scalar_lea.hbm %s765_s2, 256 }
 0x127   : > { %p485_p9 = scmp.ne.s32.totalorder %s726_s25, %s484_s8  ;;  %p489_p12 = scmp.lt.s32.totalorder %s726_s25, %s765_s2 }
 0x128   : > { %p490_p1 = scmp.lt.s32.totalorder %s488_s3, %s484_s8 }
 0x129   : > { %p486_p0 = pnand %p485_p9, %p778_p3 }
 0x12a   : > { %p491_p6 = por %p490_p1, %p489_p12 }
 0x12b   : > { %p487_p11 = pneg %p486_p0 }
 0x12d   : > { %p492_p13 = pnand %p491_p6, %p487_p11 }
 0x12f   : > { %495 = shalt.err (!%p492_p13)
}
 0x130   : > { %367 = dma.vmem_to_hbm [thread:$0]  (%p778_p3), %s250_s4, 128, %s726_s25, %s236_s23  }
 0x131 PF: > { %s261_s7 = sand.u32 1, %s526_s9   ;;  %p779_p7 = scmp.ne.s32.totalorder %s771_s22, 0 }
 0x132   : > { %p780_p8 = scmp.ge.s32.totalorder %s538_s12, 2  ;;  %s262_s14 = scalar_lea.sflag [#allocation4], %s261_s7 }
 0x134   : > { %p377_p10 = pnand %p780_p8, %p779_p7 }
 0x136   : > { %p378_p2 = pneg %p377_p10 }
 0x138   : > { %521 = dma.done.wait (%p378_p2), %s262_s14, 128  }
 0x139   : > { %523 = vsyncadd (%p378_p2), %s262_s14, 4294967168  ;;  %p18_p4 = scmp.ge.s32.totalorder %s583_s15, 4   ;;  %s781_s9 = smov %s530_s10 }
 0x13a   : > { %s782_s10 = smov %s534_s11  ;;  %s783_s11 = smov %s595_s18 }
 0x13b   : > { %s784_s12 = smov %s583_s15  ;;  %20 = sbr.rel (!%p18_p4) target bundleno = 7 (0x7), region = 86 }
 0x140   :  { %267 = vsyncpa [#allocation3], 1 }
 0x141   :  { %269 = vsyncpa [#allocation3 + $0x1], 1 }
 0x142   :  { %270 = vsyncpa [#allocation6], 1 }
 0x143   :  { %272 = vsyncpa [#allocation6 + $0x1], 1 }
 0x144   :  { %273 = vsyncpa [#allocation4], 1 }
 0x145   :  { %275 = vsyncpa [#allocation4 + $0x1], 1 }

</bundles_post_ra>
